<compile_context>
chip_gen: v5e
topology: v5e:2x2
jax: 0.10.0
libtpu: 0.0.40
codegen_flags: <defaults>
</compile_context>

<pallas_src>
import jax
import jax.numpy as jnp
from jax.experimental import pallas as pl
from jax.experimental.pallas import tpu as pltpu

_SUBLANE = 8


def _mlp_kernel(x_ref, w1_ref, b1_ref, w2_ref, b2_ref, o_ref):
    # fc1 + ReLU: (tb, in_dim) @ (in_dim, hidden) on the MXU, bias+relu on VPU.
    h = jnp.dot(x_ref[...], w1_ref[...], preferred_element_type=jnp.float32)
    h = jnp.maximum(h + b1_ref[...], 0.0)
    # fc2: output block last dim is the full n_actions (masked vst, but no
    # padded zero lanes ever hit HBM).
    o_ref[...] = jnp.dot(h, w2_ref[...], preferred_element_type=jnp.float32) + b2_ref[...]


def _round_up(x, m):
    return (x + m - 1) // m * m


def linear_dqn_forward(state, w1, b1, w2, b2, *, batch_tile=4096, use_pallas=True):
    """state: (B, in_dim) f32; w1: (in_dim, hidden); b1: (hidden,)/(1,hidden);
    w2: (hidden, n_actions); b2: (n_actions,)/(1,n_actions).
    Returns (B, n_actions) f32 == fc2(relu(fc1(state)))."""
    B, in_dim = state.shape
    hidden = w1.shape[1]
    n_actions = w2.shape[1]

    b1 = b1.reshape(1, hidden)
    b2 = b2.reshape(1, n_actions)

    if not use_pallas:
        # Latency path for tiny rollout batches: let XLA fuse the 4->128->2 MLP.
        return jnp.maximum(state @ w1 + b1, 0.0) @ w2 + b2

    # Batch tiling: pad B to a multiple of 8 only; choose the tile so any
    # over-padding is < 8 rows per tile (never 2x), and collapse to a single
    # grid step when the whole batch fits in one tile.
    B8 = _round_up(max(B, _SUBLANE), _SUBLANE)
    if B8 <= batch_tile:
        n_tiles, tb = 1, B8
    else:
        n_tiles = pl.cdiv(B8, batch_tile)
        tb = _round_up(pl.cdiv(B8, n_tiles), _SUBLANE)
    B_pad = n_tiles * tb

    x = state if B_pad == B else jnp.pad(state, ((0, B_pad - B), (0, 0)))

    cost = pl.CostEstimate(
        flops=2 * B_pad * (in_dim * hidden + hidden * n_actions),
        transcendentals=0,
        bytes_accessed=4 * (B_pad * in_dim + in_dim * hidden + hidden
                            + hidden * n_actions + n_actions
                            + B_pad * n_actions),
    )

    out = pl.pallas_call(
        _mlp_kernel,
        out_shape=jax.ShapeDtypeStruct((B_pad, n_actions), jnp.float32),
        grid=(n_tiles,),
        in_specs=[
            # Activations: tiled over the batch grid axis, full-extent K=in_dim.
            pl.BlockSpec((tb, in_dim), lambda i: (i, 0)),
            # Weights / biases: constant index_map -> VMEM-resident across steps.
            pl.BlockSpec((in_dim, hidden), lambda i: (0, 0)),
            pl.BlockSpec((1, hidden), lambda i: (0, 0)),
            pl.BlockSpec((hidden, n_actions), lambda i: (0, 0)),
            pl.BlockSpec((1, n_actions), lambda i: (0, 0)),
        ],
        out_specs=pl.BlockSpec((tb, n_actions), lambda i: (i, 0)),
        compiler_params=pltpu.CompilerParams(
            dimension_semantics=("parallel",),
        ),
        cost_estimate=cost,
    )(x, w1, b1, w2, b2)

    # Padded rows (if any) hold relu(b1)@w2+b2 garbage -> slice immediately.
    return out if B_pad == B else out[:B]


def init_params(key, in_dim, hidden, n_actions):
    """Deterministic init matching nn.Linear's default U(-1/sqrt(fan_in), 1/sqrt(fan_in)).
    Weights stored pre-transposed as (in, out) so the kernel computes x @ W."""
    k1, k2, k3, k4 = jax.random.split(key, 4)
    bound1 = 1.0 / jnp.sqrt(in_dim)
    bound2 = 1.0 / jnp.sqrt(hidden)
    w1 = jax.random.uniform(k1, (in_dim, hidden), jnp.float32, -bound1, bound1)
    b1 = jax.random.uniform(k2, (1, hidden), jnp.float32, -bound1, bound1)
    w2 = jax.random.uniform(k3, (hidden, n_actions), jnp.float32, -bound2, bound2)
    b2 = jax.random.uniform(k4, (1, n_actions), jnp.float32, -bound2, bound2)
    return w1, b1, w2, b2


if __name__ == "__main__":
    key = jax.random.PRNGKey(0)
    in_dim, hidden, n_actions = 4, 128, 2   # CartPole: input_dims=[4], n_actions=2

    kx, kp, kx2, kx3 = jax.random.split(key, 4)
    w1, b1, w2, b2 = init_params(kp, in_dim, hidden, n_actions)

    def ref_fwd(s):
        return jnp.maximum(s @ w1 + b1, 0.0) @ w2 + b2

    # Aligned inference-sized batch (single grid step).
    batch = 8
    state = jax.random.normal(kx, (batch, in_dim), jnp.float32)
    actions = linear_dqn_forward(state, w1, b1, w2, b2)
    jax.block_until_ready(actions)
    assert actions.shape == (batch, n_actions)
    assert jnp.allclose(actions, ref_fwd(state), atol=1e-5, rtol=1e-5)

    # Non-aligned batch exercises the row-padding / slicing path.
    batch2 = 5
    state2 = jax.random.normal(kx2, (batch2, in_dim), jnp.float32)
    actions2 = linear_dqn_forward(state2, w1, b1, w2, b2)
    jax.block_until_ready(actions2)
    assert actions2.shape == (batch2, n_actions)
    assert jnp.allclose(actions2, ref_fwd(state2), atol=1e-5, rtol=1e-5)

    # Multi-tile path (small batch_tile override keeps shapes small).
    batch3 = 20
    state3 = jax.random.normal(kx3, (batch3, in_dim), jnp.float32)
    actions3 = linear_dqn_forward(state3, w1, b1, w2, b2, batch_tile=8)
    jax.block_until_ready(actions3)
    assert actions3.shape == (batch3, n_actions)
    assert jnp.allclose(actions3, ref_fwd(state3), atol=1e-5, rtol=1e-5)

    print("KERNEL_OK")
</pallas_src>

<mosaic_0001>
module attributes {stable_mosaic.version = 11 : i64} {
  func.func @_mlp_kernel(%arg0: i32, %arg1: memref<8x4xf32, #tpu.memory_space<vmem>>, %arg2: memref<4x128xf32, #tpu.memory_space<vmem>>, %arg3: memref<1x128xf32, #tpu.memory_space<vmem>>, %arg4: memref<128x2xf32, #tpu.memory_space<vmem>>, %arg5: memref<1x2xf32, #tpu.memory_space<vmem>>, %arg6: memref<8x2xf32, #tpu.memory_space<vmem>>) attributes {dimension_semantics = [#tpu.dimension_semantics<parallel>], iteration_bounds = array<i64: 1>, scalar_prefetch = 0 : i64, scratch_operands = 0 : i64, tpu.core_type = #tpu.core_type<tc>, window_params = [{transform_indices = @transform_0, window_bounds = array<i64: 8, 4>}, {pipeline_mode = #tpu.pipeline_mode<synchronous>, transform_indices = @transform_1, window_bounds = array<i64: 4, 128>}, {pipeline_mode = #tpu.pipeline_mode<synchronous>, transform_indices = @transform_2, window_bounds = array<i64: 1, 128>}, {pipeline_mode = #tpu.pipeline_mode<synchronous>, transform_indices = @transform_3, window_bounds = array<i64: 128, 2>}, {pipeline_mode = #tpu.pipeline_mode<synchronous>, transform_indices = @transform_4, window_bounds = array<i64: 1, 2>}, {transform_indices = @transform_5, window_bounds = array<i64: 8, 2>}]} {
    %c0 = arith.constant 0 : index
    %c0_0 = arith.constant 0 : index
    %0 = vector.load %arg1[%c0, %c0_0] : memref<8x4xf32, #tpu.memory_space<vmem>>, vector<8x4xf32>
    %c0_1 = arith.constant 0 : index
    %c0_2 = arith.constant 0 : index
    %1 = vector.load %arg2[%c0_1, %c0_2] : memref<4x128xf32, #tpu.memory_space<vmem>>, vector<4x128xf32>
    %cst = arith.constant dense<0.000000e+00> : vector<8x128xf32>
    %2 = tpu.matmul %0, %1, %cst {dimension_numbers = #tpu.dot_dimension_numbers<[1], [0], [0], [1], [0, 0, 1, 1], [], []>} : vector<8x4xf32>, vector<4x128xf32>, vector<8x128xf32> -> vector<8x128xf32>
    %c0_3 = arith.constant 0 : index
    %c0_4 = arith.constant 0 : index
    %3 = vector.load %arg3[%c0_3, %c0_4] : memref<1x128xf32, #tpu.memory_space<vmem>>, vector<1x128xf32>
    %4 = vector.broadcast %3 : vector<1x128xf32> to vector<8x128xf32>
    %5 = arith.addf %2, %4 : vector<8x128xf32>
    %cst_5 = arith.constant 0.000000e+00 : f32
    %6 = vector.broadcast %cst_5 : f32 to vector<8x128xf32>
    %7 = arith.maximumf %5, %6 : vector<8x128xf32>
    %c0_6 = arith.constant 0 : index
    %c0_7 = arith.constant 0 : index
    %8 = vector.load %arg4[%c0_6, %c0_7] : memref<128x2xf32, #tpu.memory_space<vmem>>, vector<128x2xf32>
    %cst_8 = arith.constant dense<0.000000e+00> : vector<8x2xf32>
    %9 = tpu.matmul %7, %8, %cst_8 {dimension_numbers = #tpu.dot_dimension_numbers<[1], [0], [0], [1], [0, 0, 1, 1], [], []>} : vector<8x128xf32>, vector<128x2xf32>, vector<8x2xf32> -> vector<8x2xf32>
    %c0_9 = arith.constant 0 : index
    %c0_10 = arith.constant 0 : index
    %10 = vector.load %arg5[%c0_9, %c0_10] : memref<1x2xf32, #tpu.memory_space<vmem>>, vector<1x2xf32>
    %11 = vector.broadcast %10 : vector<1x2xf32> to vector<8x2xf32>
    %12 = arith.addf %9, %11 : vector<8x2xf32>
    %c0_11 = arith.constant 0 : index
    %c0_12 = arith.constant 0 : index
    %13 = vector.load %arg6[%c0_11, %c0_12] : memref<8x2xf32, #tpu.memory_space<vmem>>, vector<8x2xf32>
    tpu.vector_store %arg6[%c0_11, %c0_12], %12 {strides = array<i32>} : memref<8x2xf32, #tpu.memory_space<vmem>>, vector<8x2xf32>,
    return
  }
  func.func @transform_0(%arg0: i32) -> (i32, i32) {
    %c0_i32 = arith.constant 0 : i32
    %c0_i32_0 = arith.constant 0 : i32
    return %arg0, %c0_i32 : i32, i32
  }
  func.func @transform_1(%arg0: i32) -> (i32, i32) {
    %c0_i32 = arith.constant 0 : i32
    %c0_i32_0 = arith.constant 0 : i32
    %c0_i32_1 = arith.constant 0 : i32
    return %c0_i32, %c0_i32_0 : i32, i32
  }
  func.func @transform_2(%arg0: i32) -> (i32, i32) {
    %c0_i32 = arith.constant 0 : i32
    %c0_i32_0 = arith.constant 0 : i32
    %c0_i32_1 = arith.constant 0 : i32
    return %c0_i32, %c0_i32_0 : i32, i32
  }
  func.func @transform_3(%arg0: i32) -> (i32, i32) {
    %c0_i32 = arith.constant 0 : i32
    %c0_i32_0 = arith.constant 0 : i32
    %c0_i32_1 = arith.constant 0 : i32
    return %c0_i32, %c0_i32_0 : i32, i32
  }
  func.func @transform_4(%arg0: i32) -> (i32, i32) {
    %c0_i32 = arith.constant 0 : i32
    %c0_i32_0 = arith.constant 0 : i32
    %c0_i32_1 = arith.constant 0 : i32
    return %c0_i32, %c0_i32_0 : i32, i32
  }
  func.func @transform_5(%arg0: i32) -> (i32, i32) {
    %c0_i32 = arith.constant 0 : i32
    %c0_i32_0 = arith.constant 0 : i32
    return %arg0, %c0_i32 : i32, i32
  }
}

</mosaic_0001>

<bundles_post_ra>
// kernel: tpu_custom_call.1
= control target key start
LH: loop header
LB: loop body
LE: loop exit
PB: predicated region body
PF: predicated region fallthrough
CT: control target
= control target key end

     0   :  { %vm30_vm0 = vcmask 1043456   ;;  %vm26_vm1 = vcmask 31744   ;;  %vm95_vm2 = vcmask 15360   ;;  %s198_s1 = inlined_call_operand.vmem [shape: f32[4,128], index: 1, kind: input, shape index: {}]   ;;  %s199_s0 = inlined_call_operand.vmem [shape: f32[8,4], index: 0, kind: input, shape index: {}]   ;;  %s200_s3 = inlined_call_operand.vmem [shape: f32[128,2], index: 3, kind: input, shape index: {}]   ;;  %s201_s2 = inlined_call_operand.vmem [shape: f32[1,128], index: 2, kind: input, shape index: {}]   ;;  %s202_s4 = inlined_call_operand.vmem [shape: f32[1,2], index: 4, kind: input, shape index: {}]   ;;  %s203_s5 = inlined_call_operand.vmem [shape: f32[8,2], index: 5, kind: output, shape index: {}]  }
   0x1   :  { %v21_v0 = vld [vmem:[%s198_s1] sm:$0xf]  ;;  %v70_v2 = vld [vmem:[%s200_s3 + $0x78] sm:$0xff]  ;;  %v69_v3 = vld [vmem:[%s200_s3 + $0x70] sm:$0xff] }
   0x2   :  { %v20_v1 = vld [vmem:[%s199_s0] sm:$0xff]  ;;  %101 = vmatpush.msk.msra.mxu0 %vm30_vm0, %v21_v0  ;;  %75 = vmatpush.msra.mxu1 %v70_v2  ;;  %v68_v4 = vld [vmem:[%s200_s3 + $0x68] sm:$0xff]  ;;  %v66_v6 = vld [vmem:[%s200_s3 + $0x58] sm:$0xff] }
   0x3   :  { %102 = vmatmul.msk.f32.vlgmr.msra.gmra.mxu0 %vm26_vm1, %v20_v1  ;;  %v67_v5 = vld [vmem:[%s200_s3 + $0x60] sm:$0xff]  ;;  %v65_v7 = vld [vmem:[%s200_s3 + $0x50] sm:$0xff]  ;;  %v64_v8 = vld [vmem:[%s200_s3 + $0x48] sm:$0xff] }
   0x4   :  { %76 = vmatpush.msra.mxu1 %v69_v3  ;;  %v63_v9 = vld [vmem:[%s200_s3 + $0x40] sm:$0xff]  ;;  %v62_v10 = vld [vmem:[%s200_s3 + $0x38] sm:$0xff]  ;;  %v61_v11 = vld [vmem:[%s200_s3 + $0x30] sm:$0xff] }
   0x5   :  { %v60_v12 = vld [vmem:[%s200_s3 + $0x28] sm:$0xff]  ;;  %v59_v13 = vld [vmem:[%s200_s3 + $0x20] sm:$0xff]  ;;  %v58_v14 = vld [vmem:[%s200_s3 + $0x18] sm:$0xff] }
   0x6   :  { %77 = vmatpush.msra.mxu1 %v68_v4  ;;  %v57_v15 = vld [vmem:[%s200_s3 + $0x10] sm:$0xff]  ;;  %v56_v16 = vld [vmem:[%s200_s3 + $0x8] sm:$0xff]  ;;  %v55_v17 = vld [vmem:[%s200_s3] sm:$0xff] }
   0x7   :  { %v103_v18 = vld [vmem:[%s201_s2] ss:$0 sm:$0xff] }
   0x8   :  { %78 = vmatpush.msra.mxu1 %v67_v5  ;;  %v104_v22 = vld [vmem:[%s202_s4] ss:$0 sm:$0xff] }
   0xa   :  { %79 = vmatpush.msra.mxu1 %v66_v6 }
   0xc   :  { %80 = vmatpush.msra.mxu1 %v65_v7 }
   0xe   :  { %81 = vmatpush.msra.mxu1 %v64_v8 }
  0x10   :  { %82 = vmatpush.msra.mxu1 %v63_v9 }
  0x12   :  { %83 = vmatpush.msra.mxu1 %v62_v10 }
  0x14   :  { %84 = vmatpush.msra.mxu1 %v61_v11 }
  0x16   :  { %85 = vmatpush.msra.mxu1 %v60_v12 }
  0x18   :  { %86 = vmatpush.msra.mxu1 %v59_v13 }
  0x1a   :  { %87 = vmatpush.msra.mxu1 %v58_v14 }
  0x1c   :  { %88 = vmatpush.msra.mxu1 %v57_v15 }
  0x1e   :  { %89 = vmatpush.msra.mxu1 %v56_v16 }
  0x20   :  { %90 = vmatpush.msra.mxu1 %v55_v17 }
  0x80   :  { %v51_v19 = vpop.f32.mrf.mxu0 }
  0x81   :  { %v52_v20 = vadd.f32 %v103_v18, %v51_v19 }
  0x83   :  { %v54_v21 = vmax.f32 %v52_v20, 0.0 }
  0x85   :  { %91 = vmatmul.f32.vlgmr.msra.gmra.mxu1 %v54_v21 }
 0x102   :  { %v92_v23 = vpop.f32.mrf.mxu1 }
 0x103   :  { %v93_v24 = vadd.f32 %v104_v22, %v92_v23 }
 0x105   :  { %96 = vst.msk [vmem:[%s203_s5] sm:$0xff] %vm95_vm2, %v93_v24 }

</bundles_post_ra>
